<compile_context>
chip_gen: v6e
topology: v6e:2x2x1
jax: 0.10.0
libtpu: 0.0.40
codegen_flags: <defaults>
</compile_context>

<pallas_src>
import functools

import jax
import jax.numpy as jnp
from jax import lax
from jax.experimental import pallas as pl
from jax.experimental.pallas import tpu as pltpu

BN_EPS = 1e-5    # PyTorch BatchNorm1d default eps
L2_EPS = 1e-12   # clamp for the l2norm denominator (also protects overhang rows)


def _round_up(x, m):
    return (x + m - 1) // m * m


# ---------------------------------------------------------------------------
# Fused kernel: Linear (bias/BN-scale pre-folded) -> shift -> L2 normalize
# ---------------------------------------------------------------------------
def _latent_mapping_kernel(x_ref, w_ref, t_ref, o_ref, *, l2normalize):
    # x_ref: (tm, Din) f32.  Cast to bf16 on the VPU (free; avoids an extra
    # HBM pass over x in the wrapper).  w_ref is already bf16 with the BN
    # scale folded in; accumulation stays f32 on the MXU.
    x = x_ref[...].astype(w_ref.dtype)
    y = jnp.dot(x, w_ref[...], preferred_element_type=jnp.float32)
    y = y + t_ref[...]                       # folded linear bias + BN shift
    if l2normalize:
        ss = jnp.sum(y * y, axis=-1, keepdims=True)
        y = y * lax.rsqrt(jnp.maximum(ss, L2_EPS))
    o_ref[...] = y.astype(o_ref.dtype)


def latent_mapping(x, params, *, l2normalize=True, tm_max=1024,
                   matmul_dtype=jnp.bfloat16, out_dtype=jnp.float32):
    """x: (B, Din) -> (B, Dout).  Linear -> BatchNorm1d(eval) -> [l2norm]."""
    B, Din = x.shape
    Dout = params['w'].shape[1]

    # Fold eval-mode BatchNorm into the linear layer:
    #   bn(x@w + b) = (x@w + b - rm) * s + beta,   s = gamma / sqrt(rv + eps)
    #              =  x @ (w*s)  +  ((b - rm)*s + beta)
    s = params['gamma'] * lax.rsqrt(params['running_var'] + BN_EPS)
    w_f = (params['w'] * s[None, :]).astype(matmul_dtype)
    t = ((params['b'] - params['running_mean']) * s
         + params['beta']).astype(jnp.float32).reshape(1, Dout)

    # Row tile: large enough to amortize the ~0.35us/step pipeline overhead,
    # but keep >= 2 tiles for mid/large batches so megacore can split the grid.
    if B <= 8:
        tm = B                                   # single full-extent block
    else:
        tm = min(tm_max, _round_up(pl.cdiv(B, 2), 8))
    grid = (pl.cdiv(B, tm),)                     # last block may overhang (masked)

    out_itemsize = jnp.dtype(out_dtype).itemsize
    cost = pl.CostEstimate(
        flops=2 * B * Din * Dout,
        bytes_accessed=(B * Din * x.dtype.itemsize          # activations
                        + Din * Dout * 2                     # bf16 weight
                        + Dout * 4                           # shift vector
                        + B * Dout * out_itemsize),          # output
        transcendentals=B)                                   # one rsqrt / row

    out = pl.pallas_call(
        functools.partial(_latent_mapping_kernel, l2normalize=l2normalize),
        out_shape=jax.ShapeDtypeStruct((B, Dout), out_dtype),
        grid=grid,
        in_specs=[
            pl.BlockSpec((tm, Din), lambda i: (i, 0)),       # activations (tiled)
            pl.BlockSpec((Din, Dout), lambda i: (0, 0)),     # folded weight (resident)
            pl.BlockSpec((1, Dout), lambda i: (0, 0)),       # folded bias + BN shift
        ],
        out_specs=pl.BlockSpec((tm, Dout), lambda i: (i, 0)),
        compiler_params=pltpu.CompilerParams(
            dimension_semantics=("parallel",)),              # megacore on v7x
        cost_estimate=cost,
    )(x, w_f, t)
    return out


# ---------------------------------------------------------------------------
# Self test
# ---------------------------------------------------------------------------
if __name__ == "__main__":
    DIN, DOUT = 512, 256        # mapping_layers = [512, 256]; Dout lane-dense
    key = jax.random.PRNGKey(0)
    k_w, k_x1, k_x2, k_g, k_b, k_m, k_v = jax.random.split(key, 7)

    # xavier_init_fc: uniform(-r, r) weight, zero bias
    r = (6.0 / (DIN + DOUT)) ** 0.5
    params = {
        'w': jax.random.uniform(k_w, (DIN, DOUT), jnp.float32, -r, r),
        'b': jnp.zeros((DOUT,), jnp.float32),
        'gamma': 1.0 + 0.1 * jax.random.normal(k_g, (DOUT,), jnp.float32),
        'beta': 0.1 * jax.random.normal(k_b, (DOUT,), jnp.float32),
        'running_mean': 0.1 * jax.random.normal(k_m, (DOUT,), jnp.float32),
        'running_var': 1.0 + 0.1 * jnp.abs(
            jax.random.normal(k_v, (DOUT,), jnp.float32)),
    }

    def reference(x):
        # True f32 reference (matches PyTorch eval-mode forward); the kernel
        # uses bf16 matmul operands, so compare with a moderate tolerance.
        y = jnp.dot(x, params['w']) + params['b']
        y = ((y - params['running_mean'])
             * params['gamma'] * lax.rsqrt(params['running_var'] + BN_EPS)
             + params['beta'])
        return y / jnp.sqrt(jnp.sum(y * y, axis=1, keepdims=True))

    fwd = jax.jit(latent_mapping)

    # Small batch: single-tile path (whole batch in one grid step).
    x_small = jax.random.normal(k_x1, (8, DIN), jnp.float32)
    out_small = fwd(x_small, params)
    jax.block_until_ready(out_small)
    assert out_small.shape == (8, DOUT)
    assert jnp.allclose(out_small, reference(x_small), atol=2e-2, rtol=2e-2)
    assert jnp.allclose(jnp.sum(out_small ** 2, axis=1), 1.0, atol=1e-3)

    # Larger batch: exercises 2-way row tiling + masked overhang in the last block.
    x_big = jax.random.normal(k_x2, (300, DIN), jnp.float32)
    out_big = fwd(x_big, params)
    jax.block_until_ready(out_big)
    assert out_big.shape == (300, DOUT)
    assert jnp.allclose(out_big, reference(x_big), atol=2e-2, rtol=2e-2)
    assert jnp.allclose(jnp.sum(out_big ** 2, axis=1), 1.0, atol=1e-3)

    print("KERNEL_OK")
</pallas_src>

<mosaic_0001>
module attributes {stable_mosaic.version = 11 : i64} {
  func.func @_latent_mapping_kernel(%arg0: i32, %arg1: memref<8x512xf32, #tpu.memory_space<vmem>>, %arg2: memref<512x256xbf16, #tpu.memory_space<vmem>>, %arg3: memref<1x256xf32, #tpu.memory_space<vmem>>, %arg4: memref<8x256xf32, #tpu.memory_space<vmem>>) attributes {dimension_semantics = [#tpu.dimension_semantics<parallel>], iteration_bounds = array<i64: 1>, scalar_prefetch = 0 : i64, scratch_operands = 0 : i64, tpu.core_type = #tpu.core_type<tc>, window_params = [{transform_indices = @transform_0, window_bounds = array<i64: 8, 512>}, {pipeline_mode = #tpu.pipeline_mode<synchronous>, transform_indices = @transform_1, window_bounds = array<i64: 512, 256>}, {pipeline_mode = #tpu.pipeline_mode<synchronous>, transform_indices = @transform_2, window_bounds = array<i64: 1, 256>}, {transform_indices = @transform_3, window_bounds = array<i64: 8, 256>}]} {
    %c0 = arith.constant 0 : index
    %c0_0 = arith.constant 0 : index
    %0 = vector.load %arg1[%c0, %c0_0] : memref<8x512xf32, #tpu.memory_space<vmem>>, vector<8x512xf32>
    %1 = arith.truncf %0 : vector<8x512xf32> to vector<8x512xbf16>
    %c0_1 = arith.constant 0 : index
    %c0_2 = arith.constant 0 : index
    %2 = vector.load %arg2[%c0_1, %c0_2] : memref<512x256xbf16, #tpu.memory_space<vmem>>, vector<512x256xbf16>
    %cst = arith.constant dense<0.000000e+00> : vector<8x256xf32>
    %3 = tpu.matmul %1, %2, %cst {dimension_numbers = #tpu.dot_dimension_numbers<[1], [0], [0], [1], [0, 0, 1, 1], [], []>} : vector<8x512xbf16>, vector<512x256xbf16>, vector<8x256xf32> -> vector<8x256xf32>
    %c0_3 = arith.constant 0 : index
    %c0_4 = arith.constant 0 : index
    %4 = vector.load %arg3[%c0_3, %c0_4] : memref<1x256xf32, #tpu.memory_space<vmem>>, vector<1x256xf32>
    %5 = vector.broadcast %4 : vector<1x256xf32> to vector<8x256xf32>
    %6 = arith.addf %3, %5 : vector<8x256xf32>
    %7 = arith.mulf %6, %6 : vector<8x256xf32>
    %cst_5 = arith.constant dense<0.000000e+00> : vector<8xf32>
    %8 = vector.multi_reduction <add>, %7, %cst_5 [1] : vector<8x256xf32> to vector<8xf32>
    %9 = vector.shape_cast %8 : vector<8xf32> to vector<8x1xf32>
    %cst_6 = arith.constant 9.99999996E-13 : f32
    %10 = vector.broadcast %cst_6 : f32 to vector<8x1xf32>
    %11 = arith.maximumf %9, %10 : vector<8x1xf32>
    %12 = math.rsqrt %11 : vector<8x1xf32>
    %13 = vector.broadcast %12 : vector<8x1xf32> to vector<8x256xf32>
    %14 = arith.mulf %6, %13 : vector<8x256xf32>
    %c0_7 = arith.constant 0 : index
    %c0_8 = arith.constant 0 : index
    %15 = vector.load %arg4[%c0_7, %c0_8] : memref<8x256xf32, #tpu.memory_space<vmem>>, vector<8x256xf32>
    tpu.vector_store %arg4[%c0_7, %c0_8], %14 {strides = array<i32>} : memref<8x256xf32, #tpu.memory_space<vmem>>, vector<8x256xf32>,
    return
  }
  func.func @transform_0(%arg0: i32) -> (i32, i32) {
    %c0_i32 = arith.constant 0 : i32
    %c0_i32_0 = arith.constant 0 : i32
    return %arg0, %c0_i32 : i32, i32
  }
  func.func @transform_1(%arg0: i32) -> (i32, i32) {
    %c0_i32 = arith.constant 0 : i32
    %c0_i32_0 = arith.constant 0 : i32
    %c0_i32_1 = arith.constant 0 : i32
    return %c0_i32, %c0_i32_0 : i32, i32
  }
  func.func @transform_2(%arg0: i32) -> (i32, i32) {
    %c0_i32 = arith.constant 0 : i32
    %c0_i32_0 = arith.constant 0 : i32
    %c0_i32_1 = arith.constant 0 : i32
    return %c0_i32, %c0_i32_0 : i32, i32
  }
  func.func @transform_3(%arg0: i32) -> (i32, i32) {
    %c0_i32 = arith.constant 0 : i32
    %c0_i32_0 = arith.constant 0 : i32
    return %arg0, %c0_i32 : i32, i32
  }
}

</mosaic_0001>

<bundles_post_ra>
// kernel: latent_mapping.1
= control target key start
LH: loop header
LB: loop body
LE: loop exit
PB: predicated region body
PF: predicated region fallthrough
CT: control target
= control target key end

     0   :  { %s942_s0 = inlined_call_operand.vmem [shape: f32[8,512], index: 0, kind: input, shape index: {}]   ;;  %s943_s1 = inlined_call_operand.vmem [shape: bf16[512,256], index: 1, kind: input, shape index: {}]   ;;  %s944_s2 = inlined_call_operand.vmem [shape: f32[1,256], index: 2, kind: input, shape index: {}]   ;;  %s945_s3 = inlined_call_operand.hbm [shape: f32[8,256], index: 3, kind: output, shape index: {}]  }
   0x1   :  { %v591_v0 = vld [vmem:[%s943_s1 + $0x74] ss:$8 sps:$4 sm:$0xff]   ;;  %v595_v2 = vld [vmem:[%s943_s1 + $0x70] ss:$8 sps:$4 sm:$0xff]   ;;  %v597_v4 = vld [vmem:[%s943_s1 + $0x64] ss:$8 sps:$4 sm:$0xff]  }
   0x2   :  { %v593_v1 = vld [vmem:[%s943_s1 + $0x174] ss:$8 sps:$4 sm:$0xff]   ;;  %419 = vmatprep.subr.bf16.mxu0 %v591_v0  ;;  %v596_v3 = vld [vmem:[%s943_s1 + $0x170] ss:$8 sps:$4 sm:$0xff]   ;;  %v599_v5 = vld [vmem:[%s943_s1 + $0x164] ss:$8 sps:$4 sm:$0xff]  }
   0x3   :  { %460 = vmatprep.subr.bf16.mxu1 %v593_v1  ;;  %420 = vmatpush1.bf16.msra.mxu0 %v595_v2  ;;  %v601_v6 = vld [vmem:[%s943_s1 + $0x60] ss:$8 sps:$4 sm:$0xff]   ;;  %v603_v8 = vld [vmem:[%s943_s1 + $0x54] ss:$8 sps:$4 sm:$0xff]   ;;  %v607_v10 = vld [vmem:[%s943_s1 + $0x50] ss:$8 sps:$4 sm:$0xff]  }
   0x4   :  { %461 = vmatpush1.bf16.msra.mxu1 %v596_v3  ;;  %421 = vmatprep.subr.bf16.mxu0 %v597_v4  ;;  %v602_v7 = vld [vmem:[%s943_s1 + $0x160] ss:$8 sps:$4 sm:$0xff]   ;;  %v605_v9 = vld [vmem:[%s943_s1 + $0x154] ss:$8 sps:$4 sm:$0xff]   ;;  %v608_v11 = vld [vmem:[%s943_s1 + $0x150] ss:$8 sps:$4 sm:$0xff]  }
   0x5   :  { %462 = vmatprep.subr.bf16.mxu1 %v599_v5  ;;  %v609_v12 = vld [vmem:[%s943_s1 + $0x44] ss:$8 sps:$4 sm:$0xff]   ;;  %v613_v14 = vld [vmem:[%s943_s1 + $0x40] ss:$8 sps:$4 sm:$0xff]   ;;  %v615_v16 = vld [vmem:[%s943_s1 + $0x34] ss:$8 sps:$4 sm:$0xff]  }
   0x6   :  { %v611_v13 = vld [vmem:[%s943_s1 + $0x144] ss:$8 sps:$4 sm:$0xff]   ;;  %v614_v15 = vld [vmem:[%s943_s1 + $0x140] ss:$8 sps:$4 sm:$0xff]   ;;  %v617_v17 = vld [vmem:[%s943_s1 + $0x134] ss:$8 sps:$4 sm:$0xff]  }
   0x7   :  { %422 = vmatpush1.bf16.msra.mxu0 %v601_v6  ;;  %v619_v18 = vld [vmem:[%s943_s1 + $0x30] ss:$8 sps:$4 sm:$0xff]   ;;  %v621_v20 = vld [vmem:[%s943_s1 + $0x24] ss:$8 sps:$4 sm:$0xff]   ;;  %v625_v22 = vld [vmem:[%s943_s1 + $0x20] ss:$8 sps:$4 sm:$0xff]  }
   0x8   :  { %463 = vmatpush1.bf16.msra.mxu1 %v602_v7  ;;  %423 = vmatprep.subr.bf16.mxu0 %v603_v8  ;;  %v620_v19 = vld [vmem:[%s943_s1 + $0x130] ss:$8 sps:$4 sm:$0xff]   ;;  %v623_v21 = vld [vmem:[%s943_s1 + $0x124] ss:$8 sps:$4 sm:$0xff]   ;;  %v626_v23 = vld [vmem:[%s943_s1 + $0x120] ss:$8 sps:$4 sm:$0xff]  }
   0x9   :  { %464 = vmatprep.subr.bf16.mxu1 %v605_v9  ;;  %v627_v24 = vld [vmem:[%s943_s1 + $0x14] ss:$8 sps:$4 sm:$0xff]   ;;  %v631_v26 = vld [vmem:[%s943_s1 + $0x10] ss:$8 sps:$4 sm:$0xff]   ;;  %v633_v28 = vld [vmem:[%s943_s1 + $0x4] ss:$8 sps:$4 sm:$0xff]  }
   0xa   :  { %v629_v25 = vld [vmem:[%s943_s1 + $0x114] ss:$8 sps:$4 sm:$0xff]   ;;  %v632_v27 = vld [vmem:[%s943_s1 + $0x110] ss:$8 sps:$4 sm:$0xff]   ;;  %v635_v29 = vld [vmem:[%s943_s1 + $0x104] ss:$8 sps:$4 sm:$0xff]  }
   0xb   :  { %424 = vmatpush1.bf16.msra.mxu0 %v607_v10  ;;  %v637_v30 = vld [vmem:[%s943_s1] ss:$8 sps:$4 sm:$0xff]   ;;  %v639_v32 = vld [vmem:[%s943_s1 + $0xf4] ss:$8 sps:$4 sm:$0xff]   ;;  %v643_v34 = vld [vmem:[%s943_s1 + $0xf0] ss:$8 sps:$4 sm:$0xff]  }
   0xc   :  { %465 = vmatpush1.bf16.msra.mxu1 %v608_v11  ;;  %425 = vmatprep.subr.bf16.mxu0 %v609_v12  ;;  %v638_v31 = vld [vmem:[%s943_s1 + $0x100] ss:$8 sps:$4 sm:$0xff]   ;;  %v641_v33 = vld [vmem:[%s943_s1 + $0x1f4] ss:$8 sps:$4 sm:$0xff]   ;;  %v644_v35 = vld [vmem:[%s943_s1 + $0x1f0] ss:$8 sps:$4 sm:$0xff]  }
   0xd   :  { %466 = vmatprep.subr.bf16.mxu1 %v611_v13  ;;  %v645_v36 = vld [vmem:[%s943_s1 + $0xe4] ss:$8 sps:$4 sm:$0xff]   ;;  %v649_v38 = vld [vmem:[%s943_s1 + $0xe0] ss:$8 sps:$4 sm:$0xff]   ;;  %v651_v40 = vld [vmem:[%s943_s1 + $0xd4] ss:$8 sps:$4 sm:$0xff]  }
   0xe   :  { %v647_v37 = vld [vmem:[%s943_s1 + $0x1e4] ss:$8 sps:$4 sm:$0xff]   ;;  %v650_v39 = vld [vmem:[%s943_s1 + $0x1e0] ss:$8 sps:$4 sm:$0xff]   ;;  %v653_v41 = vld [vmem:[%s943_s1 + $0x1d4] ss:$8 sps:$4 sm:$0xff]  }
   0xf   :  { %426 = vmatpush1.bf16.msra.mxu0 %v613_v14  ;;  %v655_v42 = vld [vmem:[%s943_s1 + $0xd0] ss:$8 sps:$4 sm:$0xff]   ;;  %v657_v44 = vld [vmem:[%s943_s1 + $0xc4] ss:$8 sps:$4 sm:$0xff]   ;;  %v661_v49 = vld [vmem:[%s943_s1 + $0xc0] ss:$8 sps:$4 sm:$0xff]  }
  0x10   :  { %467 = vmatpush1.bf16.msra.mxu1 %v614_v15  ;;  %427 = vmatprep.subr.bf16.mxu0 %v615_v16  ;;  %v656_v43 = vld [vmem:[%s943_s1 + $0x1d0] ss:$8 sps:$4 sm:$0xff]   ;;  %v659_v45 = vld [vmem:[%s943_s1 + $0x1c4] ss:$8 sps:$4 sm:$0xff]   ;;  %v662_v50 = vld [vmem:[%s943_s1 + $0x1c0] ss:$8 sps:$4 sm:$0xff]  }
  0x11   :  { %468 = vmatprep.subr.bf16.mxu1 %v617_v17  ;;  %v16_v46 = vld [vmem:[%s942_s0 + $0x8] sm:$0xff]  ;;  %v18_v48 = vld [vmem:[%s942_s0 + $0x18] sm:$0xff] }
  0x12   :  { %v20_v47 = vpack.c.bf16 %v16_v46, %v16_v46  ;;  %v22_v51 = vpack.c.bf16 %v18_v48, %v18_v48 }
  0x13   :  { %428 = vmatpush1.bf16.msra.mxu0 %v619_v18 }
  0x14   :  { %469 = vmatpush1.bf16.msra.mxu1 %v620_v19  ;;  %429 = vmatprep.subr.bf16.mxu0 %v621_v20 }
  0x15   :  { %470 = vmatprep.subr.bf16.mxu1 %v623_v21 }
  0x17   :  { %430 = vmatpush1.bf16.msra.mxu0 %v625_v22 }
  0x18   :  { %471 = vmatpush1.bf16.msra.mxu1 %v626_v23  ;;  %431 = vmatprep.subr.bf16.mxu0 %v627_v24 }
  0x19   :  { %472 = vmatprep.subr.bf16.mxu1 %v629_v25 }
  0x1b   :  { %432 = vmatpush1.bf16.msra.mxu0 %v631_v26 }
  0x1c   :  { %473 = vmatpush1.bf16.msra.mxu1 %v632_v27  ;;  %433 = vmatprep.subr.bf16.mxu0 %v633_v28 }
  0x1d   :  { %474 = vmatprep.subr.bf16.mxu1 %v635_v29 }
  0x1f   :  { %434 = vmatpush1.bf16.msra.mxu0 %v637_v30 }
  0x20   :  { %475 = vmatpush1.bf16.msra.mxu1 %v638_v31  ;;  %435 = vmatprep.subr.bf16.mxu0 %v639_v32 }
  0x21   :  { %476 = vmatprep.subr.bf16.mxu1 %v641_v33 }
  0x23   :  { %436 = vmatpush2.bf16.msra.mxu0 %v643_v34 }
  0x24   :  { %477 = vmatpush2.bf16.msra.mxu1 %v644_v35  ;;  %437 = vmatprep.subr.bf16.mxu0 %v645_v36 }
  0x25   :  { %478 = vmatprep.subr.bf16.mxu1 %v647_v37 }
  0x27   :  { %438 = vmatpush2.bf16.msra.mxu0 %v649_v38 }
  0x28   :  { %479 = vmatpush2.bf16.msra.mxu1 %v650_v39  ;;  %439 = vmatprep.subr.bf16.mxu0 %v651_v40 }
  0x29   :  { %480 = vmatprep.subr.bf16.mxu1 %v653_v41 }
  0x2b   :  { %440 = vmatpush2.bf16.msra.mxu0 %v655_v42 }
  0x2c   :  { %481 = vmatpush2.bf16.msra.mxu1 %v656_v43 }
  0x2d   :  { %8 = vsyncpa [#allocation3], 0  ;;  %441 = vmatprep.subr.bf16.mxu0 %v657_v44  ;;  %482 = vmatprep.subr.bf16.mxu1 %v659_v45  ;;  %v663_v52 = vld [vmem:[%s943_s1 + $0xb4] ss:$8 sps:$4 sm:$0xff]   ;;  %v667_v54 = vld [vmem:[%s943_s1 + $0xb0] ss:$8 sps:$4 sm:$0xff]   ;;  %v89_v8 = vlaneseq }
  0x2e   :  { %v665_v53 = vld [vmem:[%s943_s1 + $0x1b4] ss:$8 sps:$4 sm:$0xff]   ;;  %451 = vmatprep.mubr.bf16.mxu0 %v20_v47  ;;  %492 = vmatprep.mubr.bf16.mxu1 %v22_v51  ;;  %v668_v55 = vld [vmem:[%s943_s1 + $0x1b0] ss:$8 sps:$4 sm:$0xff]   ;;  %v669_v56 = vld [vmem:[%s943_s1 + $0xa4] ss:$8 sps:$4 sm:$0xff]  }
  0x2f   :  { %442 = vmatpush2.bf16.msra.mxu0 %v661_v49  ;;  %v671_v57 = vld [vmem:[%s943_s1 + $0x1a4] ss:$8 sps:$4 sm:$0xff]   ;;  %v673_v58 = vld [vmem:[%s943_s1 + $0xa0] ss:$8 sps:$4 sm:$0xff]   ;;  %v675_v60 = vld [vmem:[%s943_s1 + $0x94] ss:$8 sps:$4 sm:$0xff]  }
  0x30   :  { %483 = vmatpush2.bf16.msra.mxu1 %v662_v50  ;;  %443 = vmatprep.subr.bf16.mxu0 %v663_v52  ;;  %v674_v59 = vld [vmem:[%s943_s1 + $0x1a0] ss:$8 sps:$4 sm:$0xff]   ;;  %v677_v61 = vld [vmem:[%s943_s1 + $0x194] ss:$8 sps:$4 sm:$0xff]   ;;  %v679_v62 = vld [vmem:[%s943_s1 + $0x90] ss:$8 sps:$4 sm:$0xff]  }
  0x31   :  { %484 = vmatprep.subr.bf16.mxu1 %v665_v53  ;;  %v680_v63 = vld [vmem:[%s943_s1 + $0x190] ss:$8 sps:$4 sm:$0xff]   ;;  %v681_v0 = vld [vmem:[%s943_s1 + $0x84] ss:$8 sps:$4 sm:$0xff]   ;;  %v685_v2 = vld [vmem:[%s943_s1 + $0x80] ss:$8 sps:$4 sm:$0xff]  }
  0x32   :  { %v683_v1 = vld [vmem:[%s943_s1 + $0x184] ss:$8 sps:$4 sm:$0xff]   ;;  %v686_v3 = vld [vmem:[%s943_s1 + $0x180] ss:$8 sps:$4 sm:$0xff]   ;;  %v17_v5 = vld [vmem:[%s942_s0 + $0x10] sm:$0xff]  ;;  %v90_v9 = vshrl.u32 %v89_v8, 7 }
  0x33   :  { %444 = vmatpush2.bf16.msra.mxu0 %v667_v54  ;;  %v15_v4 = vld [vmem:[%s942_s0] sm:$0xff]  ;;  %v21_v7 = vpack.c.bf16 %v17_v5, %v17_v5  ;;  %s711_s0 = smov [#allocation2]  }
  0x34   :  { %485 = vmatpush2.bf16.msra.mxu1 %v668_v55  ;;  %445 = vmatprep.subr.bf16.mxu0 %v669_v56  ;;  %v19_v6 = vpack.c.bf16 %v15_v4, %v15_v4  ;;  %v91_v10 = vsub.s32 0, %v90_v9  ;;  %v87_v11 = vld [vmem:[%s944_s2] sm:$0x3]  ;;  %v95_v12 = vsub.s32 1, %v90_v9  ;;  %s518_s2 = sshll.u32 %s711_s0, 4  ;;  %s519_s2 = int_to_ptr.vmem [resolvable:$true] %s518_s2 }
  0x35   :  { %486 = vmatprep.subr.bf16.mxu1 %v671_v57  ;;  %s689_s14 = scalar_lea.vmem %s519_s2, 256  ;;  %p694_p1 = scmp.lt.s32.totalorder %s519_s2, %s519_s2 }
  0x36   :  { %v92_v13 = vrot.slane %v87_v11, %v91_v10  ;;  %v96_v14 = vrot.slane %v87_v11, %v95_v12  ;;  %p690_p0 = scmp.ne.s32.totalorder %s519_s2, %s689_s14  ;;  %p695_p2 = scmp.lt.s32.totalorder %s689_s14, %s689_s14 }
  0x37   :  { %446 = vmatpush2.bf16.msra.mxu0 %v673_v58 }
  0x38   :  { %487 = vmatpush2.bf16.msra.mxu1 %v674_v59  ;;  %447 = vmatprep.subr.bf16.mxu0 %v675_v60  ;;  %p696_p3 = por %p695_p2, %p694_p1 }
  0x39   :  { %488 = vmatprep.subr.bf16.mxu1 %v677_v61 }
  0x3a   :  { %p697_p4 = pnand %p696_p3, %p690_p0 }
  0x3b   :  { %448 = vmatpush2.bf16.msra.mxu0 %v679_v62 }
  0x3c   :  { %489 = vmatpush2.bf16.msra.mxu1 %v680_v63  ;;  %449 = vmatprep.subr.bf16.mxu0 %v681_v0 }
  0x3d   :  { %490 = vmatprep.subr.bf16.mxu1 %v683_v1 }
  0x3f   :  { %450 = vmatpush2.bf16.msra.mxu0 %v685_v2 }
  0x40   :  { %491 = vmatpush2.bf16.msra.mxu1 %v686_v3 }
  0x42   :  { %452 = vmatmul.mubr.bf16.vlgmr.msra.gmra.mxu0 %v19_v6 }
  0x43   :  { %493 = vmatmul.mubr.bf16.vlgmr.msra.gmra.mxu1 %v21_v7 }
 0x102   :  { %v453_v15 = vpop.f32.mrf.mxu0 }
 0x103   :  { %v494_v16 = vpop.f32.mrf.mxu1  ;;  %v454_v17 = vadd.f32 %v453_v15, %v92_v13 }
 0x104   :  { %v455_v18 = vpop.f32.mrf.mxu0 }
 0x105   :  { %v496_v19 = vpop.f32.mrf.mxu1  ;;  %v495_v20 = vadd.f32 %v494_v16, %v454_v17  ;;  %v456_v21 = vadd.f32 %v455_v18, %v96_v14 }
 0x106   :  { %v457_v22 = vpop.f32.mrf.mxu0 }
 0x107   :  { %v498_v23 = vpop.f32.mrf.mxu1  ;;  %v497_v24 = vadd.f32 %v496_v19, %v456_v21  ;;  %v501_v27 = vmul.f32 %v495_v20, %v495_v20 }
 0x108   :  { %v458_v25 = vpop.f32.mrf.mxu0 }
 0x109   :  { %v499_v26 = vpop.f32.mrf.mxu1  ;;  %v502_v28 = vmul.f32 %v497_v24, %v497_v24 }
 0x10b   :  { %v503_v29 = vadd.f32 %v502_v28, %v501_v27 }
 0x10d   :  { %504 = vadd.xlane.f32.xlu0 %v503_v29 }
 0x196   :  { %v505_v30 = vpop.xlane.xlu0 %504 }
 0x197   :  { %v506_v31 = vmax.f32 %v505_v30, 1e-12 }
 0x199   :  { %687 = vrsqrt.f32 %v506_v31 }
 0x1a6   :  { %v688_v32 = vpop.eup %687 }
 0x1a7   :  { %v508_v33 = vmul.f32 %v688_v32, %v495_v20  ;;  %v509_v34 = vmul.f32 %v688_v32, %v497_v24 }
 0x1a9   :  { %510 = vst [vmem:[#allocation2] sm:$0xff] %v508_v33  ;;  %511 = vst [vmem:[#allocation2 + $0x8] sm:$0xff] %v509_v34 }
 0x1aa   :  { %700 = shalt.err (!%p697_p4)
}
 0x1ab   :  { %521 = dma.vmem_to_hbm [thread:$0]  %s519_s2, 256, %s945_s3, [#allocation3]  }
 0x1ac   :  { %709 = dma.done.wait [#allocation3], 256  }
 0x1ad   :  { %710 = vsyncadd [#allocation3], 4294967040 }
 0x1ae   :  { %525 = vsyncpa [#allocation3], 1 }

</bundles_post_ra>
